<compile_context>
chip_gen: v5e
topology: v5e:2x2
jax: 0.10.0
libtpu: 0.0.40
codegen_flags: <defaults>
</compile_context>

<pallas_src>
import functools

import jax
import jax.numpy as jnp
from jax.experimental import pallas as pl
from jax.experimental.pallas import tpu as pltpu


def _round_up(n, m):
    return ((n + m - 1) // m) * m


def _vmem_budget_bytes():
    """~75% of per-core VMEM; conservative 64 MiB (v7x per-TC) fallback."""
    try:
        cap = int(pltpu.get_tpu_info().vmem_capacity_bytes)
    except Exception:
        cap = 64 << 20
    return (cap * 3) // 4


def _choose_tiles(b_pad, din_pad, h_pad, use_skip, budget_bytes):
    """Pick (TN, TK, n_k) against the VMEM budget.

    Prefers the resident-x configuration (n_k == 1, full Din per step) with the
    largest TN that fits; falls back to K tiling with an f32 accumulator.  TN is
    capped so the H grid has >= 2 steps when H allows it (megacore / v7x).
    """
    XB, WB, OB, PB, AB = 2, 2, 4, 4, 4  # bf16 x/w, f32 out/params/acc

    def fits(tn, tk, n_k):
        vm = 0
        if n_k == 1:
            vm += b_pad * tk * XB                 # resident x block
        else:
            vm += 2 * b_pad * tk * XB             # double-buffered x tiles
            vm += b_pad * tn * AB                 # f32 accumulator scratch
        vm += 2 * tk * tn * WB                    # double-buffered weight tile
        vm += 2 * b_pad * tn * OB                 # double-buffered output tile
        vm += 2 * 8 * tn * PB                     # packed bias/gamma/beta
        if use_skip:
            vm += 2 * b_pad * tn * XB             # skip slice of x
        return vm <= budget_bytes

    tn_cands = [t for t in (2048, 1024, 512, 256, 128) if h_pad % t == 0]
    tn_pref = [t for t in tn_cands if h_pad // t >= 2] or tn_cands

    for tn in tn_pref:                            # resident-x path
        if fits(tn, din_pad, 1):
            return tn, din_pad, 1
    for tn in tn_pref:                            # K-tiled path
        for tk in (2048, 1024, 512, 256, 128):
            if din_pad % tk == 0 and din_pad // tk >= 2 and fits(tn, tk, din_pad // tk):
                return tn, tk, din_pad // tk
    return 128, 128, max(din_pad // 128, 1)       # last resort: smallest tiles


def _hidden_block_kernel(*refs, n_k, batch, b_pad, use_batch_norm,
                         use_skip_connection):
    # refs (in_specs order, then outputs, then scratch):
    #   x_ref  : (B_pad, TK)   bf16   streamed over K (resident when n_k == 1)
    #   w_ref  : (TK, TN)      bf16   contiguous weight tile (leading dims squeezed)
    #   p_ref  : (8, TN)       f32    row0 bias, row1 gamma, row2 beta
    #   xs_ref : (B_pad, TN)   bf16   skip slice of x (only when use_skip_connection)
    #   o_ref  : (B_pad, TN)   f32
    #   acc_ref: (B_pad, TN)   f32    scratch (only when n_k > 1)
    if use_skip_connection:
        x_ref, w_ref, p_ref, xs_ref = refs[:4]
        rest = refs[4:]
    else:
        x_ref, w_ref, p_ref = refs[:3]
        xs_ref = None
        rest = refs[3:]
    o_ref = rest[0]
    acc_ref = rest[1] if n_k > 1 else None

    # bf16 x bf16 MXU matmul with f32 accumulation.
    partial = jnp.dot(x_ref[...], w_ref[...], preferred_element_type=jnp.float32)

    if n_k > 1:
        k = pl.program_id(1)

        @pl.when(k == 0)
        def _():
            acc_ref[...] = partial

        @pl.when(k > 0)
        def _():
            acc_ref[...] += partial

    def epilogue():
        acc = partial if n_k == 1 else acc_ref[...]
        p = p_ref[...]
        bias = p[0:1, :]
        x2 = acc + bias

        if use_batch_norm:
            # Single-pass stats.  Padded batch rows of x are exactly zero, so their
            # post-linear rows equal `bias`; correct analytically instead of masking.
            s1 = jnp.sum(x2, axis=0, keepdims=True)
            s2 = jnp.sum(x2 * x2, axis=0, keepdims=True)
            n_fake = b_pad - batch
            if n_fake:
                s1 = s1 - float(n_fake) * bias
                s2 = s2 - float(n_fake) * bias * bias
            inv_b = 1.0 / float(batch)
            mean = s1 * inv_b
            var = jnp.maximum(s2 * inv_b - mean * mean, 0.0)   # guard cancellation
            x2 = (x2 - mean) * jax.lax.rsqrt(var + 1e-5)
            x2 = x2 * p[1:2, :] + p[2:3, :]

        if use_skip_connection:
            x2 = x2 + xs_ref[...].astype(jnp.float32)

        o_ref[...] = jnp.maximum(x2, 0.0)
        # TODO(synk): nn.Dropout is identity here (eval mode); training-mode dropout
        # would fold a pltpu.prng_seed/prng_random_bits keep-mask into this store.
        # TODO(synk): BatchNorm running_mean/var updates are not produced (forward
        # value only, matching training-mode batch statistics).

    if n_k == 1:
        epilogue()
    else:
        pl.when(pl.program_id(1) == n_k - 1)(epilogue)


def _prepare_params(w, b, gamma, beta, din_pad, h_pad, tn, tk):
    """Transpose / pad / retile parameters.

    NOTE: in a real model this should run once at parameter-init time and be cached;
    it lives in the wrapper here only to keep the demo self-contained.
    """
    H, Din = w.shape
    wt = jnp.asarray(w, jnp.float32).T                                  # (Din, H)
    w_p = jnp.zeros((din_pad, h_pad), jnp.float32).at[:Din, :H].set(wt)
    w_p = w_p.astype(jnp.bfloat16)
    n_h, n_k = h_pad // tn, din_pad // tk
    # (n_h, n_k, TK, TN): each per-step weight tile is one contiguous HBM slab.
    w_tiles = w_p.reshape(n_k, tk, n_h, tn).transpose(2, 0, 1, 3)

    p = jnp.zeros((8, h_pad), jnp.float32)
    p = p.at[0, :H].set(jnp.asarray(b, jnp.float32).reshape(-1))
    if gamma is not None:
        p = p.at[1, :H].set(jnp.asarray(gamma, jnp.float32).reshape(-1))
    if beta is not None:
        p = p.at[2, :H].set(jnp.asarray(beta, jnp.float32).reshape(-1))
    return w_tiles, p


def hidden_block(x, w, b, gamma=None, beta=None, *, use_batch_norm=True,
                 use_skip_connection=True, max_vmem_bytes=None):
    """Forward of Hidden_block as a Pallas TPU kernel.

    x: (B, Din) f32, w: (H, Din) f32 (nn.Linear layout), b/gamma/beta: (H,) or (1, H).
    """
    B, Din = x.shape
    H, Din_w = w.shape
    assert Din_w == Din, "weight inner dim must match input_dim"
    if use_skip_connection:
        assert Din == H, "skip connection requires input_dim == hidden_dim"
    if use_batch_norm:
        assert B > 1, "BatchNorm1d training mode needs batch > 1"
        assert gamma is not None and beta is not None

    B_pad = _round_up(B, 8)
    Din_pad = _round_up(Din, 128)
    H_pad = _round_up(H, 128)
    if use_skip_connection:
        Din_pad = H_pad = max(Din_pad, H_pad)   # skip slice must line up

    budget = max_vmem_bytes if max_vmem_bytes is not None else _vmem_budget_bytes()
    tn, tk, n_k = _choose_tiles(B_pad, Din_pad, H_pad, use_skip_connection, budget)
    n_h = H_pad // tn

    # Activations: single bf16 cast; pad only when actually needed.
    if B_pad == B and Din_pad == Din:
        x_p = jnp.asarray(x, jnp.bfloat16)
    else:
        x_p = (jnp.zeros((B_pad, Din_pad), jnp.float32)
               .at[:B, :Din].set(jnp.asarray(x, jnp.float32))).astype(jnp.bfloat16)

    w_tiles, p_p = _prepare_params(w, b, gamma, beta, Din_pad, H_pad, tn, tk)

    in_specs = [
        pl.BlockSpec((B_pad, tk), lambda j, k: (0, k)),                   # x
        pl.BlockSpec((None, None, tk, tn), lambda j, k: (j, k, 0, 0)),    # weight tile
        pl.BlockSpec((8, tn), lambda j, k: (0, j)),                       # bias/gamma/beta
    ]
    operands = [x_p, w_tiles, p_p]
    if use_skip_connection:
        in_specs.append(pl.BlockSpec((B_pad, tn), lambda j, k: (0, j)))   # skip slice
        operands.append(x_p)

    scratch = []
    if n_k > 1:
        scratch.append(pltpu.VMEM((B_pad, tn), jnp.float32))              # f32 accumulator

    kernel = functools.partial(
        _hidden_block_kernel, n_k=n_k, batch=B, b_pad=B_pad,
        use_batch_norm=use_batch_norm, use_skip_connection=use_skip_connection)

    out_p = pl.pallas_call(
        kernel,
        out_shape=jax.ShapeDtypeStruct((B_pad, H_pad), jnp.float32),
        grid_spec=pltpu.PrefetchScalarGridSpec(
            num_scalar_prefetch=0,
            grid=(n_h, n_k),
            in_specs=in_specs,
            out_specs=pl.BlockSpec((B_pad, tn), lambda j, k: (0, j)),
            scratch_shapes=scratch,
        ),
        compiler_params=pltpu.CompilerParams(
            dimension_semantics=("parallel", "arbitrary"),
            vmem_limit_bytes=int(_vmem_budget_bytes()),
        ),
    )(*operands)

    if B_pad == B and H_pad == H:
        return out_p
    return out_p[:B, :H]


def _reference(x, w, b, gamma, beta, use_batch_norm, use_skip_connection):
    x2 = x @ w.T + jnp.reshape(b, (1, -1))
    if use_batch_norm:
        mean = jnp.mean(x2, axis=0, keepdims=True)
        var = jnp.mean((x2 - mean) ** 2, axis=0, keepdims=True)
        x2 = ((x2 - mean) / jnp.sqrt(var + 1e-5) * jnp.reshape(gamma, (1, -1))
              + jnp.reshape(beta, (1, -1)))
    if use_skip_connection:
        x2 = x2 + x
    return jnp.maximum(x2, 0.0)


if __name__ == "__main__":
    # --- Test 1: small shapes, skip connection requires input_dim == hidden_dim ---
    B, Din, H = 8, 32, 32
    key = jax.random.PRNGKey(0)
    kx, kw, kb = jax.random.split(key, 3)
    x = jax.random.normal(kx, (B, Din), dtype=jnp.float32)
    bound = 1.0 / (Din ** 0.5)
    w = jax.random.uniform(kw, (H, Din), jnp.float32, -bound, bound)
    b = jax.random.uniform(kb, (1, H), jnp.float32, -bound, bound)
    gamma = jnp.ones((1, H), jnp.float32)
    beta = jnp.zeros((1, H), jnp.float32)

    out = jax.block_until_ready(
        hidden_block(x, w, b, gamma, beta,
                     use_batch_norm=True, use_skip_connection=True))
    ref = _reference(x, w, b, gamma, beta, True, True)
    assert out.shape == (B, H)
    assert jnp.allclose(out, ref, atol=3e-2, rtol=3e-2), "mismatch (test 1)"

    # --- Test 2: padded case (B not mult of 8, H not mult of 128, no skip) ---------
    B2, Din2, H2 = 13, 96, 200
    k1, k2, k3 = jax.random.split(jax.random.PRNGKey(1), 3)
    x2 = jax.random.normal(k1, (B2, Din2), jnp.float32)
    w2 = jax.random.normal(k2, (H2, Din2), jnp.float32) * 0.05
    bb2 = jax.random.normal(k3, (1, H2), jnp.float32) * 0.05
    g2 = jnp.full((1, H2), 1.3, jnp.float32)
    be2 = jnp.full((1, H2), -0.2, jnp.float32)
    out2 = jax.block_until_ready(
        hidden_block(x2, w2, bb2, g2, be2,
                     use_batch_norm=True, use_skip_connection=False))
    ref2 = _reference(x2, w2, bb2, g2, be2, True, False)
    assert out2.shape == (B2, H2)
    assert jnp.allclose(out2, ref2, atol=3e-2, rtol=3e-2), "mismatch (test 2)"

    # --- Test 3: force the K-tiled / accumulator path with a tiny VMEM budget ------
    B3, D3 = 16, 256
    k4, k5, k6 = jax.random.split(jax.random.PRNGKey(2), 3)
    x3 = jax.random.normal(k4, (B3, D3), jnp.float32)
    w3 = jax.random.normal(k5, (D3, D3), jnp.float32) * (1.0 / (D3 ** 0.5))
    b3 = jax.random.normal(k6, (1, D3), jnp.float32) * 0.05
    g3 = jnp.ones((1, D3), jnp.float32)
    be3 = jnp.zeros((1, D3), jnp.float32)
    out3 = jax.block_until_ready(
        hidden_block(x3, w3, b3, g3, be3,
                     use_batch_norm=True, use_skip_connection=True,
                     max_vmem_bytes=128 * 1024))
    ref3 = _reference(x3, w3, b3, g3, be3, True, True)
    assert out3.shape == (B3, D3)
    assert jnp.allclose(out3, ref3, atol=3e-2, rtol=3e-2), "mismatch (test 3)"

    print("KERNEL_OK")
</pallas_src>

<mosaic_0001>
module attributes {stable_mosaic.version = 11 : i64} {
  func.func @_hidden_block_kernel(%arg0: i32, %arg1: i32, %arg2: memref<8x128xbf16, #tpu.memory_space<vmem>>, %arg3: memref<1x1x128x128xbf16, #tpu.memory_space<vmem>>, %arg4: memref<8x128xf32, #tpu.memory_space<vmem>>, %arg5: memref<8x128xbf16, #tpu.memory_space<vmem>>, %arg6: memref<8x128xf32, #tpu.memory_space<vmem>>) attributes {dimension_semantics = [#tpu.dimension_semantics<parallel>, #tpu.dimension_semantics<arbitrary>], iteration_bounds = array<i64: 1, 1>, scalar_prefetch = 0 : i64, scratch_operands = 0 : i64, tpu.core_type = #tpu.core_type<tc>, window_params = [{transform_indices = @transform_0, window_bounds = array<i64: 8, 128>}, {transform_indices = @transform_1, window_bounds = array<i64: 1, 1, 128, 128>}, {transform_indices = @transform_2, window_bounds = array<i64: 8, 128>}, {transform_indices = @transform_3, window_bounds = array<i64: 8, 128>}, {transform_indices = @transform_4, window_bounds = array<i64: 8, 128>}]} {
    %c0 = arith.constant 0 : index
    %c0_0 = arith.constant 0 : index
    %0 = vector.load %arg2[%c0, %c0_0] : memref<8x128xbf16, #tpu.memory_space<vmem>>, vector<8x128xbf16>
    %c0_1 = arith.constant 0 : index
    %c0_2 = arith.constant 0 : index
    %c0_3 = arith.constant 0 : index
    %c0_4 = arith.constant 0 : index
    %1 = vector.load %arg3[%c0_1, %c0_2, %c0_3, %c0_4] : memref<1x1x128x128xbf16, #tpu.memory_space<vmem>>, vector<1x1x128x128xbf16>
    %2 = vector.shape_cast %1 : vector<1x1x128x128xbf16> to vector<128x128xbf16>
    %cst = arith.constant dense<0.000000e+00> : vector<8x128xf32>
    %3 = tpu.matmul %0, %2, %cst {dimension_numbers = #tpu.dot_dimension_numbers<[1], [0], [0], [1], [0, 0, 1, 1], [], []>} : vector<8x128xbf16>, vector<128x128xbf16>, vector<8x128xf32> -> vector<8x128xf32>
    %c0_5 = arith.constant 0 : index
    %c0_6 = arith.constant 0 : index
    %4 = vector.load %arg4[%c0_5, %c0_6] : memref<8x128xf32, #tpu.memory_space<vmem>>, vector<8x128xf32>
    %5 = vector.extract_strided_slice %4 {offsets = [0, 0], sizes = [1, 128], strides = [1, 1]} : vector<8x128xf32> to vector<1x128xf32>
    %6 = vector.broadcast %5 : vector<1x128xf32> to vector<8x128xf32>
    %7 = arith.addf %3, %6 : vector<8x128xf32>
    %cst_7 = arith.constant dense<0.000000e+00> : vector<128xf32>
    %8 = vector.multi_reduction <add>, %7, %cst_7 [0] : vector<8x128xf32> to vector<128xf32>
    %9 = vector.shape_cast %8 : vector<128xf32> to vector<1x128xf32>
    %10 = arith.mulf %7, %7 : vector<8x128xf32>
    %cst_8 = arith.constant dense<0.000000e+00> : vector<128xf32>
    %11 = vector.multi_reduction <add>, %10, %cst_8 [0] : vector<8x128xf32> to vector<128xf32>
    %12 = vector.shape_cast %11 : vector<128xf32> to vector<1x128xf32>
    %cst_9 = arith.constant 1.250000e-01 : f32
    %13 = vector.broadcast %cst_9 : f32 to vector<1x128xf32>
    %14 = arith.mulf %9, %13 : vector<1x128xf32>
    %cst_10 = arith.constant 1.250000e-01 : f32
    %15 = vector.broadcast %cst_10 : f32 to vector<1x128xf32>
    %16 = arith.mulf %12, %15 : vector<1x128xf32>
    %17 = arith.mulf %14, %14 : vector<1x128xf32>
    %18 = arith.subf %16, %17 : vector<1x128xf32>
    %cst_11 = arith.constant 0.000000e+00 : f32
    %19 = vector.broadcast %cst_11 : f32 to vector<1x128xf32>
    %20 = arith.maximumf %18, %19 : vector<1x128xf32>
    %21 = vector.broadcast %14 : vector<1x128xf32> to vector<8x128xf32>
    %22 = arith.subf %7, %21 : vector<8x128xf32>
    %cst_12 = arith.constant 9.99999974E-6 : f32
    %23 = vector.broadcast %cst_12 : f32 to vector<1x128xf32>
    %24 = arith.addf %20, %23 : vector<1x128xf32>
    %25 = math.rsqrt %24 : vector<1x128xf32>
    %26 = vector.broadcast %25 : vector<1x128xf32> to vector<8x128xf32>
    %27 = arith.mulf %22, %26 : vector<8x128xf32>
    %28 = vector.extract_strided_slice %4 {offsets = [1, 0], sizes = [1, 128], strides = [1, 1]} : vector<8x128xf32> to vector<1x128xf32>
    %29 = vector.broadcast %28 : vector<1x128xf32> to vector<8x128xf32>
    %30 = arith.mulf %27, %29 : vector<8x128xf32>
    %31 = vector.extract_strided_slice %4 {offsets = [2, 0], sizes = [1, 128], strides = [1, 1]} : vector<8x128xf32> to vector<1x128xf32>
    %32 = vector.broadcast %31 : vector<1x128xf32> to vector<8x128xf32>
    %33 = arith.addf %30, %32 : vector<8x128xf32>
    %c0_13 = arith.constant 0 : index
    %c0_14 = arith.constant 0 : index
    %34 = vector.load %arg5[%c0_13, %c0_14] : memref<8x128xbf16, #tpu.memory_space<vmem>>, vector<8x128xbf16>
    %35 = arith.extf %34 : vector<8x128xbf16> to vector<8x128xf32>
    %36 = arith.addf %33, %35 : vector<8x128xf32>
    %cst_15 = arith.constant 0.000000e+00 : f32
    %37 = vector.broadcast %cst_15 : f32 to vector<8x128xf32>
    %38 = arith.maximumf %36, %37 : vector<8x128xf32>
    %c0_16 = arith.constant 0 : index
    %c0_17 = arith.constant 0 : index
    %39 = vector.load %arg6[%c0_16, %c0_17] : memref<8x128xf32, #tpu.memory_space<vmem>>, vector<8x128xf32>
    tpu.vector_store %arg6[%c0_16, %c0_17], %38 {strides = array<i32>} : memref<8x128xf32, #tpu.memory_space<vmem>>, vector<8x128xf32>,
    return
  }
  func.func @transform_0(%arg0: i32, %arg1: i32) -> (i32, i32) {
    %c0_i32 = arith.constant 0 : i32
    %c0_i32_0 = arith.constant 0 : i32
    return %c0_i32, %arg1 : i32, i32
  }
  func.func @transform_1(%arg0: i32, %arg1: i32) -> (i32, i32, i32, i32) {
    %c0_i32 = arith.constant 0 : i32
    %c0_i32_0 = arith.constant 0 : i32
    %c0_i32_1 = arith.constant 0 : i32
    return %arg0, %arg1, %c0_i32, %c0_i32_0 : i32, i32, i32, i32
  }
  func.func @transform_2(%arg0: i32, %arg1: i32) -> (i32, i32) {
    %c0_i32 = arith.constant 0 : i32
    %c0_i32_0 = arith.constant 0 : i32
    return %c0_i32, %arg0 : i32, i32
  }
  func.func @transform_3(%arg0: i32, %arg1: i32) -> (i32, i32) {
    %c0_i32 = arith.constant 0 : i32
    %c0_i32_0 = arith.constant 0 : i32
    return %c0_i32, %arg0 : i32, i32
  }
  func.func @transform_4(%arg0: i32, %arg1: i32) -> (i32, i32) {
    %c0_i32 = arith.constant 0 : i32
    %c0_i32_0 = arith.constant 0 : i32
    return %c0_i32, %arg0 : i32, i32
  }
}

</mosaic_0001>

<bundles_post_ra>
// kernel: tpu_custom_call.1
= control target key start
LH: loop header
LB: loop body
LE: loop exit
PB: predicated region body
PF: predicated region fallthrough
CT: control target
= control target key end

     0   :  { %9 = vsyncpa [#allocation3], 0  ;;  %s438_s0 = inlined_call_operand.hbm [shape: bf16[8,128], index: 0, kind: input, shape index: {}]   ;;  %s439_s1 = inlined_call_operand.hbm [shape: bf16[1,1,128,128], index: 1, kind: input, shape index: {}]   ;;  %s440_s2 = inlined_call_operand.hbm [shape: f32[8,128], index: 2, kind: input, shape index: {}]   ;;  %s441_s3 = inlined_call_operand.hbm [shape: bf16[8,128], index: 3, kind: input, shape index: {}]   ;;  %s442_s4 = inlined_call_operand.hbm [shape: f32[8,128], index: 4, kind: output, shape index: {}]  }
   0x1   :  { %10 = vsyncpa [#allocation6], 0 }
   0x2   :  { %11 = vsyncpa [#allocation9], 0  ;;  %s28_s17 = sshll.u32 %s439_s1, 4  ;;  %s29_s17 = int_to_ptr.hbm [resolvable:$true] %s28_s17 }
   0x3   :  { %12 = vsyncpa [#allocation4], 0  ;;  %s391_s18 = smov [#allocation5]   ;;  %s18_s22 = sshll.u32 %s438_s0, 4  ;;  %s19_s22 = int_to_ptr.hbm [resolvable:$true] %s18_s22 }
   0x4   :  { %s30_s19 = sshll.u32 %s391_s18, 4  ;;  %s392_s23 = smov 64   ;;  %s31_s19 = int_to_ptr.vmem [resolvable:$true] %s30_s19 }
   0x5   :  { %s393_s24 = smov 4   ;;  %s394_s25 = smov [#allocation2]  }
   0x6   :  { %36 = dma.hbm_to_vmem [thread:$0]  %s29_s17, 1024, %s31_s19, [#allocation6], %s392_s23, %s392_s23, %s393_s24  }
   0x7   :  { %s20_s26 = sshll.u32 %s394_s25, 4  ;;  %s42_s29 = sshll.u32 %s440_s2, 4  ;;  %s21_s26 = int_to_ptr.vmem [resolvable:$true] %s20_s26  ;;  %s43_s29 = int_to_ptr.hbm [resolvable:$true] %s42_s29 }
   0x8   :  { %23 = dma.hbm_to_vmem [thread:$0]  %s19_s22, 64, %s21_s26, [#allocation3]  }
   0x9   :  { %s53_s5 = sshll.u32 %s441_s3, 4  ;;  %s395_s6 = smov [#allocation7]   ;;  %s54_s5 = int_to_ptr.hbm [resolvable:$true] %s53_s5 }
   0xa   :  { %s44_s7 = sshll.u32 %s395_s6, 4  ;;  %s396_s0 = smov [#allocation8]   ;;  %s45_s7 = int_to_ptr.vmem [resolvable:$true] %s44_s7 }
   0xb   :  { %47 = dma.hbm_to_vmem [thread:$0]  %s43_s29, 128, %s45_s7, [#allocation6]  }
   0xc   :  { %s55_s8 = sshll.u32 %s396_s0, 4  ;;  %s56_s8 = int_to_ptr.vmem [resolvable:$true] %s55_s8 }
   0xd   :  { %58 = dma.hbm_to_vmem [thread:$0]  %s54_s5, 64, %s56_s8, [#allocation9]  }
   0xe   :  { %383 = dma.done.wait [#allocation3], 64  }
   0xf   :  { %384 = vsyncadd [#allocation3], 4294967232 }
  0x10   :  { %385 = dma.done.wait [#allocation6], 1152  }
  0x11   :  { %386 = vsyncadd [#allocation6], 4294966144 }
  0x12   :  { %387 = dma.done.wait [#allocation9], 64  }
  0x13   :  { %388 = vsyncadd [#allocation9], 4294967232  ;;  %v253_v0 = vld [vmem:[#allocation5 + $0x38] sm:$0xff]  ;;  %v252_v1 = vld [vmem:[#allocation5 + $0x30] sm:$0xff]  ;;  %s397_s2 = smov [#allocation10]   ;;  %s202_s11 = sshll.u32 %s442_s4, 4  ;;  %s203_s11 = int_to_ptr.hbm [resolvable:$true] %s202_s11 }
  0x14   :  { %142 = vmatpush.bf16.msra.mxu0 %v253_v0  ;;  %v251_v2 = vld [vmem:[#allocation5 + $0x28] sm:$0xff]  ;;  %v250_v3 = vld [vmem:[#allocation5 + $0x20] sm:$0xff]  ;;  %v249_v4 = vld [vmem:[#allocation5 + $0x18] sm:$0xff]  ;;  %s200_s3 = sshll.u32 %s397_s2, 4  ;;  %s201_s3 = int_to_ptr.vmem [resolvable:$true] %s200_s3 }
  0x15   :  { %v248_v5 = vld [vmem:[#allocation5 + $0x10] sm:$0xff]  ;;  %v247_v6 = vld [vmem:[#allocation5 + $0x8] sm:$0xff]  ;;  %v246_v7 = vld [vmem:[#allocation5] sm:$0xff] }
  0x16   :  { %v75_v8 = vld [vmem:[#allocation2] sm:$0xf]  ;;  %v92_v9 = vld [vmem:[#allocation7] sm:$0xff]  ;;  %v190_v42 = vld [vmem:[#allocation8] sm:$0xf] }
  0x17   :  { %v93_v10 = vperm.slane %v92_v9, 0  ;;  %v186_v40 = vperm.slane %v92_v9, 1  ;;  %v188_v44 = vperm.slane %v92_v9, 2  ;;  %v191_v46 = vunpack.c.l.bf16 %v190_v42 }
  0x18   :  { %143 = vmatpush.bf16.msra.mxu0 %v252_v1 }
  0x1c   :  { %144 = vmatpush.bf16.msra.mxu0 %v251_v2 }
  0x20   :  { %145 = vmatpush.bf16.msra.mxu0 %v250_v3 }
  0x24   :  { %146 = vmatpush.bf16.msra.mxu0 %v249_v4 }
  0x28   :  { %147 = vmatpush.bf16.msra.mxu0 %v248_v5 }
  0x2c   :  { %148 = vmatpush.bf16.msra.mxu0 %v247_v6 }
  0x30   :  { %149 = vmatpush.bf16.msra.mxu0 %v246_v7 }
  0x33   :  { %150 = vmatmul.bf16.vlgmr.msra.gmra.mxu0 %v75_v8 }
  0xb0   :  { %v151_v11 = vpop.f32.mrf.mxu0 }
  0xb1   :  { %v152_v12 = vadd.f32 %v151_v11, %v93_v10 }
  0xb3   :  { %v155_v13 = vrot.slane %v152_v12, 4  ;;  %v161_v14 = vmul.f32 %v152_v12, %v152_v12 }
  0xb5   :  { %v156_v15 = vadd.f32 %v155_v13, %v152_v12  ;;  %v162_v16 = vrot.slane %v161_v14, 4 }
  0xb7   :  { %v157_v17 = vrot.slane %v156_v15, 2  ;;  %v163_v18 = vadd.f32 %v162_v16, %v161_v14 }
  0xb8   :  { %v153_v19 = vpop.f32.mrf.mxu0 }
  0xb9   :  { %v158_v20 = vadd.f32 %v157_v17, %v156_v15  ;;  %v164_v21 = vrot.slane %v163_v18, 2 }
  0xbb   :  { %v159_v22 = vrot.slane %v158_v20, 1  ;;  %v165_v23 = vadd.f32 %v164_v21, %v163_v18 }
  0xbd   :  { %v160_v24 = vadd.f32 %v159_v22, %v158_v20  ;;  %v166_v25 = vrot.slane %v165_v23, 1 }
  0xbf   :  { %v167_v26 = vadd.f32 %v166_v25, %v165_v23  ;;  %v168_v27 = vmul.f32 0.125, %v160_v24 }
  0xc1   :  { %v169_v28 = vmul.f32 0.125, %v167_v26  ;;  %v170_v29 = vmul.f32 %v168_v27, %v168_v27  ;;  %v173_v39 = vsub.f32 %v152_v12, %v168_v27 }
  0xc3   :  { %v171_v30 = vsub.f32 %v169_v28, %v170_v29 }
  0xc5   :  { %v172_v31 = vmax.f32 %v171_v30, 0.0 }
  0xc7   :  { %v174_v32 = vadd.f32 1e-05, %v172_v31 }
  0xc9   :  { %261 = vrsqrt.f32 %v174_v32  ;;  %vm181_vm1 = vweird.f32 %v174_v32 }
  0xcf   :  { %v262_v33 = vpop.eup %261 }
  0xd0   :  { %v176_v34 = vmul.f32 %v262_v33, %v174_v32  ;;  %vm182_vm0 = vweird.f32 %v262_v33 }
  0xd1   :  { %vm183_vm2 = vmor %vm181_vm1, %vm182_vm0 }
  0xd2   :  { %v177_v35 = vmul.f32 %v262_v33, %v176_v34 }
  0xd4   :  { %v178_v36 = vmul.f32 0.5, %v177_v35 }
  0xd6   :  { %v179_v37 = vsub.f32 1.5, %v178_v36 }
  0xd8   :  { %v180_v38 = vmul.f32 %v262_v33, %v179_v37 }
  0xda   :  { %v184_v41 = vsel %vm183_vm2, %v262_v33, %v180_v38 }
  0xdb   :  { %v185_v43 = vmul.f32 %v184_v41, %v173_v39 }
  0xdd   :  { %v187_v45 = vmul.f32 %v186_v40, %v185_v43 }
  0xdf   :  { %v189_v47 = vadd.f32 %v188_v44, %v187_v45 }
  0xe1   :  { %v192_v48 = vadd.f32 %v191_v46, %v189_v47 }
  0xe3   :  { %v193_v49 = vmax.f32 %v192_v48, 0.0 }
  0xe5   :  { %194 = vst [vmem:[#allocation10] sm:$0xff] %v193_v49 }
  0xe6   :  { %205 = dma.vmem_to_hbm [thread:$0]  %s201_s3, 128, %s203_s11, [#allocation4]  }
  0xe7   :  { %389 = dma.done.wait [#allocation4], 128  }
  0xe8   :  { %390 = vsyncadd [#allocation4], 4294967168 }
  0xe9   :  { %210 = vsyncpa [#allocation3], 1 }
  0xea   :  { %211 = vsyncpa [#allocation6], 1 }
  0xeb   :  { %212 = vsyncpa [#allocation9], 1 }
  0xec   :  { %213 = vsyncpa [#allocation4], 1 }

</bundles_post_ra>
